<compile_context>
chip_gen: v5e
topology: v5e:2x2
jax: 0.10.0
libtpu: 0.0.40
codegen_flags: <defaults>
</compile_context>

<pallas_src>
import jax
import jax.numpy as jnp
from jax.experimental import pallas as pl
from jax.experimental.pallas import tpu as pltpu


def _round_up(x: int, m: int) -> int:
    return ((x + m - 1) // m) * m


def _vmem_budget_bytes() -> int:
    """~75% of per-core VMEM capacity; conservative 48 MiB fallback (v7x-safe)."""
    try:
        cap = int(pltpu.get_tpu_info().vmem_capacity_bytes)
    except Exception:
        cap = 64 * 1024 * 1024
    return int(0.75 * cap)


def _head_kernel(x_ref, w_ref, b_ref, o_ref):
    # x_ref: (TM, H) native dtype | w_ref: (H, Cp) bf16 | b_ref: (1, Cp) f32
    # o_ref: (TM, Cp) caller dtype
    # Cast x at the MXU input (VPU op) instead of a separate wrapper pass.
    xb = x_ref[...].astype(jnp.bfloat16)
    z = jnp.dot(xb, w_ref[...], preferred_element_type=jnp.float32) + b_ref[...]
    # Numerically-stable log-softmax over the padded class axis.  Padded
    # classes carry bias = -1e30 and zero weight columns, so they never win
    # the max nor contribute to the logsumexp.  `z` is overwritten in place
    # to keep the number of live (TM, Cp) f32 temporaries small.
    z = z - jnp.max(z, axis=-1, keepdims=True)
    lse = jnp.log(jnp.sum(jnp.exp(z), axis=-1, keepdims=True))
    o_ref[...] = (z - lse).astype(o_ref.dtype)


class ClassificationHead:
    """Linear(H -> C, bias) + LogSoftmax(dim=2), Pallas TPU forward.

    `weight` is (H, C) (i.e. nn.Linear.weight.T), `bias` is (C,).
    """

    # Below this many rows (B*T), a single fused XLA op beats the pallas_call
    # launch + slice overhead on every TPU generation.
    MIN_PALLAS_ROWS = 256

    def __init__(self, weight, bias):
        H, C = weight.shape
        self.H, self.C = int(H), int(C)
        self.C_pad = _round_up(max(self.C, 1), 128)
        # One-time (per-module) parameter padding / casting — hoisted out of
        # the per-call path.
        self.w_pad = (jnp.zeros((self.H, self.C_pad), jnp.float32)
                      .at[:, :self.C].set(weight.astype(jnp.float32))
                      .astype(jnp.bfloat16))
        self.b_pad = (jnp.full((1, self.C_pad), -1e30, dtype=jnp.float32)
                      .at[0, :self.C].set(bias.astype(jnp.float32)))
        self.weight = weight
        self.bias = bias

    # ---- fused-XLA fallback for tiny problems -------------------------------
    def _xla_forward(self, x):
        logits = jnp.einsum("bth,hc->btc", x, self.weight.astype(x.dtype))
        logits = logits + self.bias.astype(x.dtype)
        return jax.nn.log_softmax(logits, axis=2)

    # ---- Pallas path ---------------------------------------------------------
    def __call__(self, x, *, tile_rows=None, use_pallas=None):
        B, T, H = x.shape
        assert H == self.H
        rows = B * T

        if use_pallas is None:
            use_pallas = rows >= self.MIN_PALLAS_ROWS
        if not use_pallas:
            return self._xla_forward(x)

        budget = _vmem_budget_bytes()
        if tile_rows is None:
            # 512 everywhere; 1024 on 128-MiB-VMEM parts (v5e/v6e) when there
            # are enough rows to still keep several grid steps.
            tile_rows = 1024 if (budget >= 90 * 1024 * 1024 and rows >= 2048) else 512

        # Multiple of 16 (sublane packing), no larger than the problem needs.
        tile_rows = max(16, min(_round_up(tile_rows, 16), _round_up(rows, 16)))
        # Keep >= 2 grid steps when possible so v7x's two TensorCores both get
        # work (harmless on the single-core v5e / v6e).
        if rows >= 32:
            tile_rows = min(tile_rows, _round_up(pl.cdiv(rows, 2), 16))

        x_bytes = jnp.dtype(x.dtype).itemsize
        C_pad = self.C_pad

        def _vmem_need(tm):
            return (2 * tm * H * x_bytes          # x tiles (double-buffered)
                    + 2 * tm * C_pad * x_bytes    # out tiles (double-buffered)
                    + 2 * H * C_pad * 2           # resident weight (bf16)
                    + 2 * C_pad * 4               # resident bias (f32)
                    + 3 * tm * C_pad * 4)         # f32 matmul / softmax temporaries

        # Shrink the tile if a very large H would blow the per-core budget.
        while _vmem_need(tile_rows) > budget and tile_rows > 16:
            tile_rows = max(16, _round_up(tile_rows // 2, 16))
        vmem_limit = int(min(max(2 * _vmem_need(tile_rows), 16 * 1024 * 1024), budget))

        # No pad, no dtype convert: the kernel reads x directly from HBM.
        # NOTE: the ragged final row block computes on unspecified padding
        # rows; any inf/nan stays confined to those rows, whose stores Pallas
        # masks, so they never reach HBM.
        x2d = x.reshape(rows, H)

        out2d = pl.pallas_call(
            _head_kernel,
            out_shape=jax.ShapeDtypeStruct((rows, C_pad), x.dtype),
            grid_spec=pltpu.PrefetchScalarGridSpec(
                num_scalar_prefetch=0,
                grid=(pl.cdiv(rows, tile_rows),),
                in_specs=[
                    pl.BlockSpec((tile_rows, H), lambda i: (i, 0)),
                    # Grid-invariant params: constant index_map -> fetched once.
                    # (pl.Buffered(1) would also drop the second VMEM buffer;
                    #  skipped since the saving is negligible at these sizes.)
                    pl.BlockSpec((H, C_pad), lambda i: (0, 0)),
                    pl.BlockSpec((1, C_pad), lambda i: (0, 0)),
                ],
                out_specs=pl.BlockSpec((tile_rows, C_pad), lambda i: (i, 0)),
            ),
            compiler_params=pltpu.CompilerParams(
                dimension_semantics=("parallel",),
                vmem_limit_bytes=vmem_limit),
        )(x2d, self.w_pad, self.b_pad)

        return out2d[:, :self.C].reshape(B, T, self.C)


def classification_head(x, weight, bias, **kwargs):
    """Functional convenience wrapper (pads params per call; prefer the class)."""
    return ClassificationHead(weight, bias)(x, **kwargs)


if __name__ == "__main__":
    # Shapes implied by the module: (batch, seq, hidden) -> (batch, seq, nclasses)
    B, T, H, C = 2, 8, 32, 10

    key = jax.random.PRNGKey(0)
    kx, kw, kb = jax.random.split(key, 3)

    x = jax.random.normal(kx, (B, T, H), dtype=jnp.float32)
    bound = 1.0 / (H ** 0.5)
    weight = jax.random.uniform(kw, (H, C), minval=-bound, maxval=bound,
                                dtype=jnp.float32)
    bias = jax.random.uniform(kb, (C,), minval=-bound, maxval=bound,
                              dtype=jnp.float32)

    head = ClassificationHead(weight, bias)
    # Force the Pallas path: the auto-dispatch would route these tiny shapes
    # to the fused-XLA fallback.
    out = head(x, use_pallas=True)
    out = jax.block_until_ready(out)
    assert out.shape == (B, T, C)

    # Reference matched to the kernel's numerics (bf16 MXU inputs, f32 accum).
    logits_bf16 = jnp.einsum(
        "bth,hc->btc",
        x.astype(jnp.bfloat16), weight.astype(jnp.bfloat16),
        preferred_element_type=jnp.float32) + bias
    ref_bf16 = jax.nn.log_softmax(logits_bf16, axis=2)
    assert jnp.max(jnp.abs(out - ref_bf16)) < 1e-3, "mismatch vs bf16-matched ref"

    # Loose sanity check against the full-f32 reference (bf16 rounding only).
    ref_f32 = jax.nn.log_softmax(jnp.einsum("bth,hc->btc", x, weight) + bias,
                                 axis=2)
    assert jnp.max(jnp.abs(out - ref_f32)) < 5e-2

    print("KERNEL_OK")
</pallas_src>

<mosaic_0001>
module attributes {stable_mosaic.version = 11 : i64} {
  func.func @_head_kernel(%arg0: i32, %arg1: memref<16x32xf32, #tpu.memory_space<vmem>>, %arg2: memref<32x128xbf16, #tpu.memory_space<vmem>>, %arg3: memref<1x128xf32, #tpu.memory_space<vmem>>, %arg4: memref<16x128xf32, #tpu.memory_space<vmem>>) attributes {dimension_semantics = [#tpu.dimension_semantics<parallel>], iteration_bounds = array<i64: 1>, scalar_prefetch = 0 : i64, scratch_operands = 0 : i64, tpu.core_type = #tpu.core_type<tc>, window_params = [{transform_indices = @transform_0, window_bounds = array<i64: 16, 32>}, {pipeline_mode = #tpu.pipeline_mode<synchronous>, transform_indices = @transform_1, window_bounds = array<i64: 32, 128>}, {pipeline_mode = #tpu.pipeline_mode<synchronous>, transform_indices = @transform_2, window_bounds = array<i64: 1, 128>}, {transform_indices = @transform_3, window_bounds = array<i64: 16, 128>}]} {
    %c0 = arith.constant 0 : index
    %c0_0 = arith.constant 0 : index
    %0 = vector.load %arg1[%c0, %c0_0] : memref<16x32xf32, #tpu.memory_space<vmem>>, vector<16x32xf32>
    %1 = arith.truncf %0 : vector<16x32xf32> to vector<16x32xbf16>
    %c0_1 = arith.constant 0 : index
    %c0_2 = arith.constant 0 : index
    %2 = vector.load %arg2[%c0_1, %c0_2] : memref<32x128xbf16, #tpu.memory_space<vmem>>, vector<32x128xbf16>
    %cst = arith.constant dense<0.000000e+00> : vector<16x128xf32>
    %3 = tpu.matmul %1, %2, %cst {dimension_numbers = #tpu.dot_dimension_numbers<[1], [0], [0], [1], [0, 0, 1, 1], [], []>} : vector<16x32xbf16>, vector<32x128xbf16>, vector<16x128xf32> -> vector<16x128xf32>
    %c0_3 = arith.constant 0 : index
    %c0_4 = arith.constant 0 : index
    %4 = vector.load %arg3[%c0_3, %c0_4] : memref<1x128xf32, #tpu.memory_space<vmem>>, vector<1x128xf32>
    %5 = vector.broadcast %4 : vector<1x128xf32> to vector<16x128xf32>
    %6 = arith.addf %3, %5 : vector<16x128xf32>
    %cst_5 = arith.constant dense<0xFF800000> : vector<16xf32>
    %7 = vector.multi_reduction <maximumf>, %6, %cst_5 [1] : vector<16x128xf32> to vector<16xf32>
    %8 = vector.shape_cast %7 : vector<16xf32> to vector<16x1xf32>
    %9 = vector.broadcast %8 : vector<16x1xf32> to vector<16x128xf32>
    %10 = arith.subf %6, %9 : vector<16x128xf32>
    %11 = math.exp %10 : vector<16x128xf32>
    %cst_6 = arith.constant dense<0.000000e+00> : vector<16xf32>
    %12 = vector.multi_reduction <add>, %11, %cst_6 [1] : vector<16x128xf32> to vector<16xf32>
    %13 = vector.shape_cast %12 : vector<16xf32> to vector<16x1xf32>
    %14 = math.log %13 : vector<16x1xf32>
    %15 = vector.broadcast %14 : vector<16x1xf32> to vector<16x128xf32>
    %16 = arith.subf %10, %15 : vector<16x128xf32>
    %c0_7 = arith.constant 0 : index
    %c0_8 = arith.constant 0 : index
    %17 = vector.load %arg4[%c0_7, %c0_8] : memref<16x128xf32, #tpu.memory_space<vmem>>, vector<16x128xf32>
    tpu.vector_store %arg4[%c0_7, %c0_8], %16 {strides = array<i32>} : memref<16x128xf32, #tpu.memory_space<vmem>>, vector<16x128xf32>,
    return
  }
  func.func @transform_0(%arg0: i32) -> (i32, i32) {
    %c0_i32 = arith.constant 0 : i32
    %c0_i32_0 = arith.constant 0 : i32
    return %arg0, %c0_i32 : i32, i32
  }
  func.func @transform_1(%arg0: i32) -> (i32, i32) {
    %c0_i32 = arith.constant 0 : i32
    %c0_i32_0 = arith.constant 0 : i32
    %c0_i32_1 = arith.constant 0 : i32
    return %c0_i32, %c0_i32_0 : i32, i32
  }
  func.func @transform_2(%arg0: i32) -> (i32, i32) {
    %c0_i32 = arith.constant 0 : i32
    %c0_i32_0 = arith.constant 0 : i32
    %c0_i32_1 = arith.constant 0 : i32
    return %c0_i32, %c0_i32_0 : i32, i32
  }
  func.func @transform_3(%arg0: i32) -> (i32, i32) {
    %c0_i32 = arith.constant 0 : i32
    %c0_i32_0 = arith.constant 0 : i32
    return %arg0, %c0_i32 : i32, i32
  }
}

</mosaic_0001>

<bundles_post_ra>
// kernel: tpu_custom_call.1
= control target key start
LH: loop header
LB: loop body
LE: loop exit
PB: predicated region body
PF: predicated region fallthrough
CT: control target
= control target key end

     0   :  { %8 = vsyncpa [#allocation3], 0  ;;  %s281_s0 = inlined_call_operand.hbm [shape: f32[16,32], index: 0, kind: input, shape index: {}]   ;;  %s282_s1 = inlined_call_operand.hbm [shape: bf16[32,128], index: 1, kind: input, shape index: {}]   ;;  %s283_s2 = inlined_call_operand.vmem [shape: f32[1,128], index: 2, kind: input, shape index: {}]   ;;  %s284_s3 = inlined_call_operand.hbm [shape: f32[16,128], index: 3, kind: output, shape index: {}]  }
   0x1   :  { %9 = vsyncpa [#allocation6], 0 }
   0x2   :  { %10 = vsyncpa [#allocation4], 0  ;;  %s15_s14 = sshll.u32 %s281_s0, 4  ;;  %s236_s15 = smov [#allocation2]   ;;  %s16_s14 = int_to_ptr.hbm [resolvable:$true] %s15_s14 }
   0x3   :  { %s17_s16 = sshll.u32 %s236_s15, 4  ;;  %s28_s19 = sshll.u32 %s282_s1, 4  ;;  %s18_s16 = int_to_ptr.vmem [resolvable:$true] %s17_s16  ;;  %s29_s19 = int_to_ptr.hbm [resolvable:$true] %s28_s19 }
   0x4   :  { %s237_s20 = smov 128   ;;  %s238_s21 = smov 8  }
   0x5   :  { %23 = dma.hbm_to_vmem [thread:$0]  %s16_s14, 256, %s18_s16, [#allocation3], %s237_s20, %s237_s20, %s238_s21  }
   0x6   :  { %s239_s22 = smov [#allocation5]   ;;  %s240_s24 = smov 64  }
   0x7   :  { %s30_s23 = sshll.u32 %s239_s22, 4  ;;  %s241_s0 = smov 4   ;;  %s31_s23 = int_to_ptr.vmem [resolvable:$true] %s30_s23 }
   0x8   :  { %36 = dma.hbm_to_vmem [thread:$0]  %s29_s19, 256, %s31_s23, [#allocation6], %s240_s24, %s240_s24, %s241_s0  }
   0x9   :  { %230 = dma.done.wait [#allocation3], 256  }
   0xa   :  { %231 = vsyncadd [#allocation3], 4294967040 }
   0xb   :  { %232 = dma.done.wait [#allocation6], 256  }
   0xc   :  { %233 = vsyncadd [#allocation6], 4294967040  ;;  %v141_v0 = vld [vmem:[#allocation5 + $0x8] sm:$0xff]  ;;  %v140_v1 = vld [vmem:[#allocation5] sm:$0xff]  ;;  %vm71_vm0 = vcmask 261120   ;;  %s117_s29 = sshll.u32 %s284_s3, 4  ;;  %s118_s29 = int_to_ptr.hbm [resolvable:$true] %s117_s29 }
   0xd   :  { %81 = vmatpush.bf16.msra.mxu0 %v141_v0  ;;  %v48_v2 = vld [vmem:[#allocation2] sm:$0xff]  ;;  %v49_v3 = vld [vmem:[#allocation2 + $0x8] sm:$0xff] }
   0xe   :  { %v50_v4 = vpack.c.bf16 %v49_v3, %v48_v2  ;;  %v149_v5 = vld [vmem:[%s283_s2] ss:$0 sm:$0xff]  ;;  %s242_s2 = smov [#allocation7]  }
   0xf   :  { %s115_s26 = sshll.u32 %s242_s2, 4  ;;  %s116_s26 = int_to_ptr.vmem [resolvable:$true] %s115_s26 }
  0x11   :  { %82 = vmatpush.bf16.msra.mxu0 %v140_v1 }
  0x14   :  { %139 = vmatmul.msk.bf16.vlgmr.msra.gmra.mxu0 %vm71_vm0, %v50_v4 }
  0x91   :  { %v84_v6 = vpop.f32.mrf.mxu0 }
  0x92   :  { %v85_v7 = vadd.f32 %v149_v5, %v84_v6 }
  0x94   :  { %89 = vmax.xlane.f32.xlu0 %v85_v7 }
  0x99   :  { %v86_v8 = vpop.f32.mrf.mxu0 }
  0x9a   :  { %v87_v9 = vadd.f32 %v149_v5, %v86_v8 }
  0x9c   :  { %91 = vmax.xlane.f32.xlu0 %v87_v9 }
 0x107   :  { %v90_v10 = vpop.xlane.xlu0 %89 }
 0x108   :  { %v93_v11 = vsub.f32 %v85_v7, %v90_v10 }
 0x10a   :  { %v95_v12 = vmul.f32 1.442695, %v93_v11 }
 0x10c   :  { %150 = vpow2.f32 %v95_v12 }
 0x10f   :  { %v92_v13 = vpop.xlane.xlu0 %91 }
 0x110   :  { %v94_v14 = vsub.f32 %v87_v9, %v92_v13 }
 0x112   :  { %v151_v15 = vpop.eup %150  ;;  %v97_v16 = vmul.f32 1.442695, %v94_v14 }
 0x113   :  { %99 = vadd.xlane.f32.xlu1 %v151_v15 }
 0x114   :  { %152 = vpow2.f32 %v97_v16 }
 0x11a   :  { %v153_v17 = vpop.eup %152 }
 0x11b   :  { %101 = vadd.xlane.f32.xlu1 %v153_v17 }
 0x186   :  { %v100_v18 = vpop.xlane.xlu1 %99 }
 0x187   :  { %154 = vlog2.f32 %v100_v18 }
 0x18d   :  { %v155_v19 = vpop.eup %154 }
 0x18e   :  { %v104_v20 = vmul.f32 0.6931472, %v155_v19  ;;  %v102_v21 = vpop.xlane.xlu1 %101 }
 0x18f   :  { %156 = vlog2.f32 %v102_v21 }
 0x190   :  { %v107_v22 = vsub.f32 %v93_v11, %v104_v20 }
 0x192   :  { %109 = vst [vmem:[#allocation7] sm:$0xff] %v107_v22 }
 0x195   :  { %v157_v23 = vpop.eup %156 }
 0x196   :  { %v106_v24 = vmul.f32 0.6931472, %v157_v23 }
 0x198   :  { %v108_v25 = vsub.f32 %v94_v14, %v106_v24 }
 0x19a   :  { %110 = vst [vmem:[#allocation7 + $0x8] sm:$0xff] %v108_v25 }
 0x19b   :  { %123 = dma.vmem_to_hbm [thread:$0]  %s116_s26, 256, %s118_s29, [#allocation4], %s237_s20, %s237_s20, %s238_s21  }
 0x19c   :  { %234 = dma.done.wait [#allocation4], 256  }
 0x19d   :  { %235 = vsyncadd [#allocation4], 4294967040 }
 0x19e   :  { %128 = vsyncpa [#allocation3], 1 }
 0x19f   :  { %129 = vsyncpa [#allocation6], 1 }
 0x1a0   :  { %130 = vsyncpa [#allocation4], 1 }

</bundles_post_ra>
